<compile_context>
chip_gen: v6e
topology: v6e:2x2x1
jax: 0.10.0
libtpu: 0.0.40
codegen_flags: <defaults>
</compile_context>

<pallas_src>
import jax
import jax.numpy as jnp
from jax.experimental import pallas as pl
from jax.experimental.pallas import tpu as pltpu

EPS = 1e-5  # nn.LayerNorm default


def _layernorm_kernel(x_ref, g_ref, b_ref, o_ref):
    # x_ref/o_ref: (TB, C, T); g_ref/b_ref: (C, 1)
    x = x_ref[...].astype(jnp.float32)                              # (TB, C, T)
    # One-pass stats: after these reductions only (TB, 1, T) values are live.
    mean = jnp.mean(x, axis=1, keepdims=True)                       # (TB, 1, T)
    mean_sq = jnp.mean(x * x, axis=1, keepdims=True)                # (TB, 1, T)
    var = jnp.maximum(mean_sq - mean * mean, 0.0)                   # biased, like torch
    inv = jax.lax.rsqrt(var + EPS)                                  # EUP rsqrt
    g = g_ref[...].astype(jnp.float32)[None, :, :]                  # (1, C, 1)
    b = b_ref[...].astype(jnp.float32)[None, :, :]
    # Fused output expression re-reading x_ref (keeps block-sized temps short-lived).
    o_ref[...] = ((x_ref[...].astype(jnp.float32) - mean) * inv * g + b).astype(o_ref.dtype)


def _cdiv(a, b):
    return -(-a // b)


def _round_down_128(n):
    return (n // 128) * 128


def _pick_tiles(b, c, hw, dtype):
    """Pick (tile_b, tile_hw) by a byte budget + VMEM-footprint estimate."""
    itemsize = jnp.dtype(dtype).itemsize
    # Sublane-padded channel count (VMEM/VPU footprint; HBM traffic unaffected).
    sublane = {4: 8, 2: 16, 1: 32}.get(itemsize, 8)
    c_pad = _cdiv(c, sublane) * sublane

    target_bytes = 4 << 20     # ~4 MiB of HBM traffic per x block (dtype-agnostic)
    vmem_budget = 32 << 20     # conservative: fits v5e/v6e/v7x with headroom
    min_block_bytes = 1 << 20  # don't split below ~1 MiB/step just for megacore

    def vmem_estimate(tb, thw):
        block = tb * c_pad * thw
        # 2x double-buffered input + 2x output (native dtype) + ~3 f32 temps.
        return 4 * block * itemsize + 3 * block * 4

    if hw >= 128:
        tile_b = 1
        tile_hw = max(128, _round_down_128(target_bytes // max(c * itemsize, 1)))
        if tile_hw >= hw:
            tile_hw = hw  # full extent is always a legal block
        # Shrink until the (padding-aware) VMEM estimate fits.
        while tile_hw > 128 and vmem_estimate(1, tile_hw) > vmem_budget:
            tile_hw = max(128, _round_down_128(tile_hw // 2))
        # Megacore: hard requirement of >=2 grid steps when the shape allows it.
        if b * _cdiv(hw, tile_hw) < 2 and tile_hw > 128:
            tile_hw = max(128, _round_down_128(_cdiv(hw, 2)))
        # Soft target of >=4 steps, as long as blocks stay >= ~1 MiB of HBM traffic.
        while (b * _cdiv(hw, tile_hw) < 4 and tile_hw > 256
               and (tile_hw // 2) * c * itemsize >= min_block_bytes):
            tile_hw = max(128, _round_down_128(tile_hw // 2))
    else:
        # Tiny spatial maps (e.g. 7x7): keep lanes full (= hw) and block the batch
        # instead, amortizing the ~0.35 us/step overhead over several samples.
        tile_hw = hw
        per_sample = max(c * hw * itemsize, 1)
        tile_b = max(1, min(b, target_bytes // per_sample))
        while tile_b > 1 and vmem_estimate(tile_b, hw) > vmem_budget:
            tile_b = max(1, tile_b // 2)
        if b > 1:
            tile_b = min(tile_b, max(1, _cdiv(b, 2)))          # >=2 steps
            if (_cdiv(b, tile_b) < 4 and tile_b > 1
                    and max(1, tile_b // 2) * per_sample >= min_block_bytes):
                tile_b = min(tile_b, max(1, _cdiv(b, 4)))      # >=4 steps if still big
    return tile_b, tile_hw


@jax.jit
def layer_norm_proxy(x_nchw, gamma, beta):
    """Forward of LayerNormProxy.

    x_nchw: (B, C, H, W); gamma, beta: (C,).  Returns (B, C, H, W).
    """
    b, c, h, w = x_nchw.shape
    hw = h * w
    x3d = x_nchw.reshape(b, c, hw)                  # pure reshape, no HBM transpose
    tile_b, tile_hw = _pick_tiles(b, c, hw, x_nchw.dtype)

    g2d = gamma.reshape(c, 1)
    b2d = beta.reshape(c, 1)

    grid = (pl.cdiv(b, tile_b), pl.cdiv(hw, tile_hw))   # ragged tails handled by Pallas
    itemsize = jnp.dtype(x_nchw.dtype).itemsize
    cost = pl.CostEstimate(
        flops=7 * b * c * hw,
        transcendentals=b * hw,                     # one rsqrt per (b, hw) position
        bytes_accessed=2 * b * c * hw * itemsize + 2 * c * 4,
    )

    out3d = pl.pallas_call(
        _layernorm_kernel,
        out_shape=jax.ShapeDtypeStruct((b, c, hw), x_nchw.dtype),
        grid_spec=pltpu.PrefetchScalarGridSpec(
            num_scalar_prefetch=0,
            grid=grid,
            in_specs=[
                pl.BlockSpec((tile_b, c, tile_hw), lambda bi, hi: (bi, 0, hi)),
                pl.BlockSpec((c, 1), lambda bi, hi: (0, 0)),
                pl.BlockSpec((c, 1), lambda bi, hi: (0, 0)),
            ],
            out_specs=pl.BlockSpec((tile_b, c, tile_hw), lambda bi, hi: (bi, 0, hi)),
        ),
        compiler_params=pltpu.CompilerParams(
            dimension_semantics=("parallel", "parallel"),
            vmem_limit_bytes=48 << 20,   # above v5e's 16 MiB default, < v7x's 64 MiB physical
        ),
        cost_estimate=cost,
    )(x3d, g2d, b2d)

    return out3d.reshape(b, c, h, w)


def _reference(x_nchw, gamma, beta):
    x = jnp.transpose(x_nchw, (0, 2, 3, 1)).astype(jnp.float32)
    mean = jnp.mean(x, axis=-1, keepdims=True)
    var = jnp.mean((x - mean) ** 2, axis=-1, keepdims=True)
    y = (x - mean) * jax.lax.rsqrt(var + EPS) * gamma + beta
    return jnp.transpose(y, (0, 3, 1, 2)).astype(x_nchw.dtype)


if __name__ == "__main__":
    key = jax.random.PRNGKey(0)
    kx, kg, kb = jax.random.split(key, 3)

    B, C, H, W = 2, 4, 16, 16
    x = jax.random.normal(kx, (B, C, H, W), dtype=jnp.float32)
    # Deterministic (synthetic) LayerNorm affine parameters of shape (dim,) = (C,).
    gamma = 1.0 + 0.1 * jax.random.normal(kg, (C,), dtype=jnp.float32)
    beta = 0.1 * jax.random.normal(kb, (C,), dtype=jnp.float32)

    out = layer_norm_proxy(x, gamma, beta)
    out = jax.block_until_ready(out)

    ref = _reference(x, gamma, beta)
    assert out.shape == (B, C, H, W)
    assert jnp.allclose(out, ref, atol=1e-5, rtol=1e-5), "mismatch vs reference"

    print("KERNEL_OK")
</pallas_src>

<mosaic_0001>
module attributes {stable_mosaic.version = 11 : i64} {
  func.func @_layernorm_kernel(%arg0: i32, %arg1: i32, %arg2: memref<1x4x256xf32, #tpu.memory_space<vmem>>, %arg3: memref<4x1xf32, #tpu.memory_space<vmem>>, %arg4: memref<4x1xf32, #tpu.memory_space<vmem>>, %arg5: memref<1x4x256xf32, #tpu.memory_space<vmem>>) attributes {dimension_semantics = [#tpu.dimension_semantics<parallel>, #tpu.dimension_semantics<parallel>], iteration_bounds = array<i64: 2, 1>, scalar_prefetch = 0 : i64, scratch_operands = 0 : i64, tpu.core_type = #tpu.core_type<tc>, window_params = [{transform_indices = @transform_0, window_bounds = array<i64: 1, 4, 256>}, {pipeline_mode = #tpu.pipeline_mode<synchronous>, transform_indices = @transform_1, window_bounds = array<i64: 4, 1>}, {pipeline_mode = #tpu.pipeline_mode<synchronous>, transform_indices = @transform_2, window_bounds = array<i64: 4, 1>}, {transform_indices = @transform_3, window_bounds = array<i64: 1, 4, 256>}]} {
    %c0 = arith.constant 0 : index
    %c0_0 = arith.constant 0 : index
    %c0_1 = arith.constant 0 : index
    %0 = vector.load %arg2[%c0, %c0_0, %c0_1] : memref<1x4x256xf32, #tpu.memory_space<vmem>>, vector<1x4x256xf32>
    %cst = arith.constant dense<0.000000e+00> : vector<1x256xf32>
    %1 = vector.multi_reduction <add>, %0, %cst [1] : vector<1x4x256xf32> to vector<1x256xf32>
    %2 = vector.shape_cast %1 : vector<1x256xf32> to vector<1x1x256xf32>
    %cst_2 = arith.constant 4.000000e+00 : f32
    %3 = vector.broadcast %cst_2 : f32 to vector<1x1x256xf32>
    %4 = arith.divf %2, %3 : vector<1x1x256xf32>
    %5 = arith.mulf %0, %0 : vector<1x4x256xf32>
    %cst_3 = arith.constant dense<0.000000e+00> : vector<1x256xf32>
    %6 = vector.multi_reduction <add>, %5, %cst_3 [1] : vector<1x4x256xf32> to vector<1x256xf32>
    %7 = vector.shape_cast %6 : vector<1x256xf32> to vector<1x1x256xf32>
    %cst_4 = arith.constant 4.000000e+00 : f32
    %8 = vector.broadcast %cst_4 : f32 to vector<1x1x256xf32>
    %9 = arith.divf %7, %8 : vector<1x1x256xf32>
    %10 = arith.mulf %4, %4 : vector<1x1x256xf32>
    %11 = arith.subf %9, %10 : vector<1x1x256xf32>
    %cst_5 = arith.constant 0.000000e+00 : f32
    %12 = vector.broadcast %cst_5 : f32 to vector<1x1x256xf32>
    %13 = arith.maximumf %11, %12 : vector<1x1x256xf32>
    %cst_6 = arith.constant 9.99999974E-6 : f32
    %14 = vector.broadcast %cst_6 : f32 to vector<1x1x256xf32>
    %15 = arith.addf %13, %14 : vector<1x1x256xf32>
    %16 = math.rsqrt %15 : vector<1x1x256xf32>
    %c0_7 = arith.constant 0 : index
    %c0_8 = arith.constant 0 : index
    %17 = vector.load %arg3[%c0_7, %c0_8] : memref<4x1xf32, #tpu.memory_space<vmem>>, vector<4x1xf32>
    %18 = vector.shape_cast %17 : vector<4x1xf32> to vector<1x4x1xf32>
    %c0_9 = arith.constant 0 : index
    %c0_10 = arith.constant 0 : index
    %19 = vector.load %arg4[%c0_9, %c0_10] : memref<4x1xf32, #tpu.memory_space<vmem>>, vector<4x1xf32>
    %20 = vector.shape_cast %19 : vector<4x1xf32> to vector<1x4x1xf32>
    %c0_11 = arith.constant 0 : index
    %c0_12 = arith.constant 0 : index
    %c0_13 = arith.constant 0 : index
    %21 = vector.load %arg2[%c0_11, %c0_12, %c0_13] : memref<1x4x256xf32, #tpu.memory_space<vmem>>, vector<1x4x256xf32>
    %22 = vector.broadcast %4 : vector<1x1x256xf32> to vector<1x4x256xf32>
    %23 = arith.subf %21, %22 : vector<1x4x256xf32>
    %24 = vector.broadcast %16 : vector<1x1x256xf32> to vector<1x4x256xf32>
    %25 = arith.mulf %23, %24 : vector<1x4x256xf32>
    %26 = vector.broadcast %18 : vector<1x4x1xf32> to vector<1x4x256xf32>
    %27 = arith.mulf %25, %26 : vector<1x4x256xf32>
    %28 = vector.broadcast %20 : vector<1x4x1xf32> to vector<1x4x256xf32>
    %29 = arith.addf %27, %28 : vector<1x4x256xf32>
    %c0_14 = arith.constant 0 : index
    %c0_15 = arith.constant 0 : index
    %c0_16 = arith.constant 0 : index
    %30 = vector.load %arg5[%c0_14, %c0_15, %c0_16] : memref<1x4x256xf32, #tpu.memory_space<vmem>>, vector<1x4x256xf32>
    tpu.vector_store %arg5[%c0_14, %c0_15, %c0_16], %29 {strides = array<i32>} : memref<1x4x256xf32, #tpu.memory_space<vmem>>, vector<1x4x256xf32>,
    return
  }
  func.func @transform_0(%arg0: i32, %arg1: i32) -> (i32, i32, i32) {
    %c0_i32 = arith.constant 0 : i32
    %c0_i32_0 = arith.constant 0 : i32
    return %arg0, %c0_i32, %arg1 : i32, i32, i32
  }
  func.func @transform_1(%arg0: i32, %arg1: i32) -> (i32, i32) {
    %c0_i32 = arith.constant 0 : i32
    %c0_i32_0 = arith.constant 0 : i32
    %c0_i32_1 = arith.constant 0 : i32
    return %c0_i32, %c0_i32_0 : i32, i32
  }
  func.func @transform_2(%arg0: i32, %arg1: i32) -> (i32, i32) {
    %c0_i32 = arith.constant 0 : i32
    %c0_i32_0 = arith.constant 0 : i32
    %c0_i32_1 = arith.constant 0 : i32
    return %c0_i32, %c0_i32_0 : i32, i32
  }
  func.func @transform_3(%arg0: i32, %arg1: i32) -> (i32, i32, i32) {
    %c0_i32 = arith.constant 0 : i32
    %c0_i32_0 = arith.constant 0 : i32
    return %arg0, %c0_i32, %arg1 : i32, i32, i32
  }
}

</mosaic_0001>

<bundles_post_ra>
// kernel: layer_norm_proxy.1
= control target key start
LH: loop header
LB: loop body
LE: loop exit
PB: predicated region body
PF: predicated region fallthrough
CT: control target
= control target key end

     0   :  { %s479_s12 = smov 0   ;;  %s481_s13 = smov 0   ;;  %s525_s0 = inlined_call_operand.vmem [shape: f32[2,4,256], index: 0, kind: input, shape index: {}]   ;;  %s526_s1 = inlined_call_operand.vmem [shape: f32[4,1], index: 1, kind: input, shape index: {}]   ;;  %s527_s2 = inlined_call_operand.vmem [shape: f32[4,1], index: 2, kind: input, shape index: {}]   ;;  %s528_s3 = inlined_call_operand.vmem [shape: f32[2,4,256], index: 3, kind: output, shape index: {}]  }
   0x1   :  { %s483_s14 = smov 0  }
   0x2 LB: > { %s25_s15 = sadd.s32 1, %s451_s13  ;;  %p392_p0 = scmp.ge.s32.totalorder %s455_s14, 1  ;;  %s455_s14 = sphi %s483_s14, %s13_s14   ;;  %s451_s13 = sphi %s481_s13, %s530_s13   ;;  %s447_s12 = sphi %s479_s12, %s529_s12  }
   0x3   : > { %p27_p1 = scmp.ge.s32.totalorder %s25_s15, 2  ;;  %p158_p2 = scmp.lt.s32.totalorder %s455_s14, 3 }
   0x5   : > { %s532_s15 = smov (%p27_p1, %s25_s15), 0  ;;  %p159_p3 = pnand %p392_p0, %p158_p2 }
   0x6   : > { %p191_p4 = scmp.lt.s32.totalorder (!%p159_p3), %s447_s12, 1 }
   0x7   : > { %162 = sbr.rel (%p159_p3) target bundleno = 147 (0x93), region = 32 }
   0xc   : > { %v262_v0 = vld [vmem:[%s526_s1] sm:$0xf]  ;;  %v457_v1 = vmov 0   ;;  %s534_s12 = smov (!%p191_p4, %s447_s12), 1  ;;  %vm214_vm0 = vcmask 1043456   ;;  %v281_v49 = vlaneseq }
   0xd   : > { %427 = vset.pattern.permute.xlu0 %v457_v1  ;;  %v263_v2 = vld [vmem:[%s527_s2] sm:$0xf]  ;;  %s399_s20 = sshll.u32 %s534_s12, 3  ;;  %v458_v47 = vmov 839922192  }
   0xe   : > { %276 = vperm.xlu0 %427, %v262_v0   ;;  %s198_s23 = scalar_lea.vmem %s525_s0, %s399_s20  ;;  %v279_v48 = vunpack.c.l.s4 %v458_v47  ;;  %v282_v52 = vshrl.u32 %v281_v49, 7  ;;  %s208_s26 = scalar_lea.vmem %s528_s3, %s399_s20 }
   0xf   : > { %v210_v3 = vld [vmem:[%s198_s23] sm:$0xff] }
  0x10   : > { %v212_v4 = vcombine.high %v210_v3, %v210_v3  ;;  %v232_v5 = vmul.f32 %v210_v3, %v210_v3  ;;  %v215_v6 = vsel %vm214_vm0, %v210_v3, 0.0  ;;  %v280_v51 = vunpack.c.0.s8 %v279_v48 }
  0x11   : > { %v216_v9 = vrot.slane %v215_v6, 4 }
  0x12   : > { %289 = vperm.xlu0 %427, %v263_v2   ;;  %v222_v7 = vsel %vm214_vm0, %v212_v4, 0.0  ;;  %v234_v8 = vcombine.high %v232_v5, %v232_v5  ;;  %v236_v11 = vsel %vm214_vm0, %v232_v5, 0.0  ;;  %v283_v55 = vsub.s32 %v280_v51, %v282_v52 }
  0x13   : > { %v223_v10 = vrot.slane %v222_v7, 4  ;;  %v217_v13 = vadd.f32 %v216_v9, %v215_v6  ;;  %v237_v14 = vrot.slane %v236_v11, 4 }
  0x14   : > { %v243_v12 = vsel %vm214_vm0, %v234_v8, 0.0 }
  0x15   : > { %v224_v15 = vadd.f32 %v223_v10, %v222_v7  ;;  %v244_v16 = vrot.slane %v243_v12, 4  ;;  %v218_v17 = vrot.slane %v217_v13, 2  ;;  %v238_v18 = vadd.f32 %v237_v14, %v236_v11 }
  0x17   : > { %v225_v19 = vrot.slane %v224_v15, 2  ;;  %v245_v20 = vadd.f32 %v244_v16, %v243_v12  ;;  %v219_v21 = vadd.f32 %v218_v17, %v217_v13  ;;  %v239_v22 = vrot.slane %v238_v18, 2 }
  0x19   : > { %v226_v23 = vadd.f32 %v225_v19, %v224_v15  ;;  %v246_v24 = vrot.slane %v245_v20, 2  ;;  %v220_v25 = vrot.slane %v219_v21, 1  ;;  %v240_v26 = vadd.f32 %v239_v22, %v238_v18 }
  0x1b   : > { %v227_v27 = vrot.slane %v226_v23, 1  ;;  %v247_v28 = vadd.f32 %v246_v24, %v245_v20  ;;  %v221_v29 = vadd.f32 %v220_v25, %v219_v21  ;;  %v241_v30 = vrot.slane %v240_v26, 1 }
  0x1d   : > { %v228_v31 = vadd.f32 %v227_v27, %v226_v23  ;;  %v248_v32 = vrot.slane %v247_v28, 1  ;;  %v230_v33 = vmul.f32 0.25, %v221_v29  ;;  %v242_v34 = vadd.f32 %v241_v30, %v240_v26 }
  0x1f   : > { %v231_v35 = vmul.f32 0.25, %v228_v31  ;;  %v249_v36 = vadd.f32 %v248_v32, %v247_v28  ;;  %v250_v37 = vmul.f32 0.25, %v242_v34  ;;  %v252_v38 = vmul.f32 %v230_v33, %v230_v33 }
  0x21   : > { %v251_v39 = vmul.f32 0.25, %v249_v36  ;;  %v253_v40 = vmul.f32 %v231_v35, %v231_v35  ;;  %v254_v41 = vsub.f32 %v250_v37, %v252_v38  ;;  %v266_v53 = vcombine.low %v230_v33, %v231_v35 }
  0x23   : > { %v255_v42 = vsub.f32 %v251_v39, %v253_v40  ;;  %v256_v43 = vmax.f32 %v254_v41, 0.0  ;;  %v268_v56 = vsub.f32 %v210_v3, %v266_v53 }
  0x25   : > { %v257_v44 = vmax.f32 %v255_v42, 0.0  ;;  %v258_v45 = vadd.f32 1e-05, %v256_v43 }
  0x27   : > { %v259_v46 = vadd.f32 1e-05, %v257_v44  ;;  %429 = vrsqrt.f32 %v258_v45 }
  0x29   : > { %431 = vrsqrt.f32 %v259_v46 }
  0x34   : > { %v430_v50 = vpop.eup %429 }
  0x36   : > { %v432_v54 = vpop.eup %431 }
  0x37   : > { %v271_v57 = vcombine.low %v430_v50, %v432_v54 }
  0x39   : > { %v273_v59 = vmul.f32 %v271_v57, %v268_v56 }
  0x89   : > { %v277_v58 = vpop.permute.xlu0 %276 }
  0x8a   : > { %v284_v60 = vrot.slane %v277_v58, %v283_v55 }
  0x8c   : > { %v286_v62 = vmul.f32 %v284_v60, %v273_v59 }
  0x8d   : > { %v290_v61 = vpop.permute.xlu0 %289 }
  0x8e   : > { %v297_v63 = vrot.slane %v290_v61, %v283_v55 }
  0x90   : > { %v299_v0 = vadd.f32 %v297_v63, %v286_v62 }
  0x92   : > { %300 = vst [vmem:[%s208_s26] sm:$0xff] %v299_v0 }
  0x93 PF: > { %s13_s14 = sadd.s32 1, %s455_s14   ;;  %s529_s12 = smov %s451_s13 }
  0x94   : > { %p10_p5 = scmp.ge.s32.totalorder %s13_s14, 4   ;;  %s530_s13 = smov %s532_s15 }
  0x96   :  { %12 = sbr.rel (!%p10_p5) target bundleno = 2 (0x2), region = 62 }

</bundles_post_ra>
